<compile_context>
chip_gen: v7x
topology: tpu7x:2x2x1
jax: 0.10.0
libtpu: 0.0.40
codegen_flags: <defaults>
</compile_context>

<pallas_src>
import jax
import jax.numpy as jnp
from jax.experimental import pallas as pl
from jax.experimental.pallas import tpu as pltpu

LANE = 128


def _round_up(n, m):
    return ((n + m - 1) // m) * m


def _leaky_relu(x, slope=0.01):
    # matches torch.nn.LeakyReLU() default negative_slope=0.01
    return jnp.where(x >= 0, x, slope * x)


def _sigmoid(x):
    # exp -> EUP, approximate reciprocal -> EUP; keeps VALU slots free.
    return pl.reciprocal(1.0 + jnp.exp(-x), approx=True)


def cycle_ae_kernel(x_ref,
                    w1_ref, b1_ref, w2_ref, b2_ref,   # encoder params
                    w3_ref, b3_ref, w4_ref, b4_ref,   # decoder params
                    z_ref, xr_ref, zr_ref):
    # Hoist parameter reads once (encoder params are reused for the cycle
    # re-encode; hoisting avoids duplicate VMEM loads / broadcasts).
    w1 = w1_ref[...]
    w2 = w2_ref[...]
    w3 = w3_ref[...]
    w4 = w4_ref[...]
    b1 = b1_ref[...]
    b2 = b2_ref[...]
    b3 = b3_ref[...]
    b4 = b4_ref[...]

    def mm(h, w):
        # bf16 x bf16 operands, f32 accumulation on the MXU.
        return jnp.dot(h.astype(jnp.bfloat16), w,
                       preferred_element_type=jnp.float32)

    def encoder(h):
        h1 = _leaky_relu(mm(h, w1) + b1)
        return _sigmoid(mm(h1, w2) + b2)

    def decoder(h):
        h1 = _leaky_relu(mm(h, w3) + b3)
        return _sigmoid(mm(h1, w4) + b4)

    x = x_ref[...]
    z = encoder(x)
    x_recon = decoder(z)
    z_recon = encoder(x_recon)

    z_ref[...] = z.astype(z_ref.dtype)
    xr_ref[...] = x_recon.astype(xr_ref.dtype)
    zr_ref[...] = z_recon.astype(zr_ref.dtype)


def cycle_ae_forward(x, params):
    """x: (B, d0) float32.  params: W1..W4 stored (in,out), b1..b4 (1,out)."""
    B, d0 = x.shape
    d1 = params["W1"].shape[1]
    d2 = params["W2"].shape[1]

    d0p = _round_up(d0, LANE)
    d1p = _round_up(d1, LANE)
    d2p = _round_up(d2, LANE)

    # Batch tile: as large as possible up to 128 (amortizes the ~0.35 us per
    # grid-step overhead and fills the MXU row dimension).  For the small test
    # case (B=16) this is tb=16 with grid=(1,).
    tb = min(128, _round_up(B, 8))
    b_pad = _round_up(B, tb)

    # Zero-pad to lane-dense shapes.  Zero-padded weight rows/cols guarantee
    # the padded lanes never leak into the real outputs (sliced off below).
    xp = jnp.zeros((b_pad, d0p), jnp.float32).at[:B, :d0].set(x)

    def pad_w(w, rp, cp):
        wp = jnp.zeros((rp, cp), jnp.float32).at[:w.shape[0], :w.shape[1]].set(w)
        return wp.astype(jnp.bfloat16)           # bf16 MXU operands

    def pad_b(b, cp):
        return jnp.zeros((1, cp), jnp.float32).at[:, :b.shape[1]].set(b)

    w1 = pad_w(params["W1"], d0p, d1p); b1 = pad_b(params["b1"], d1p)
    w2 = pad_w(params["W2"], d1p, d2p); b2 = pad_b(params["b2"], d2p)
    w3 = pad_w(params["W3"], d2p, d1p); b3 = pad_b(params["b3"], d1p)
    w4 = pad_w(params["W4"], d1p, d0p); b4 = pad_b(params["b4"], d0p)

    grid = (b_pad // tb,)

    def inv_spec(shape):
        # Grid-invariant parameter: single-buffered (no double-buffer copies).
        return pl.BlockSpec(shape, lambda i: (0, 0),
                            pipeline_mode=pl.Buffered(buffer_count=1))

    in_specs = [
        pl.BlockSpec((tb, d0p), lambda i: (i, 0)),     # x, tiled over batch
        inv_spec((d0p, d1p)), inv_spec((1, d1p)),      # W1, b1
        inv_spec((d1p, d2p)), inv_spec((1, d2p)),      # W2, b2
        inv_spec((d2p, d1p)), inv_spec((1, d1p)),      # W3, b3
        inv_spec((d1p, d0p)), inv_spec((1, d0p)),      # W4, b4
    ]
    out_specs = [
        pl.BlockSpec((tb, d2p), lambda i: (i, 0)),     # z
        pl.BlockSpec((tb, d0p), lambda i: (i, 0)),     # x_recon
        pl.BlockSpec((tb, d2p), lambda i: (i, 0)),     # z_recon
    ]
    out_shape = (
        jax.ShapeDtypeStruct((b_pad, d2p), jnp.float32),
        jax.ShapeDtypeStruct((b_pad, d0p), jnp.float32),
        jax.ShapeDtypeStruct((b_pad, d2p), jnp.float32),
    )

    zp, xrp, zrp = pl.pallas_call(
        cycle_ae_kernel,
        out_shape=out_shape,
        grid_spec=pltpu.PrefetchScalarGridSpec(
            num_scalar_prefetch=0,
            grid=grid,
            in_specs=in_specs,
            out_specs=out_specs,
        ),
        compiler_params=pltpu.CompilerParams(
            # Batch axis is embarrassingly parallel; shards across the two
            # TensorCores on v7x whenever the grid has >= 2 steps.
            dimension_semantics=("parallel",)),
    )(xp, w1, b1, w2, b2, w3, b3, w4, b4)

    # Strip lane/batch padding back off.
    return zp[:B, :d2], xrp[:B, :d0], zrp[:B, :d2]


def init_params(key, input_dims):
    """Deterministic synthetic init mirroring the PyTorch layer shapes.
    Linear(d_in -> d_out): weight (d_out, d_in) stored transposed as (d_in, d_out)."""
    d0, d1, d2 = input_dims
    keys = jax.random.split(key, 8)

    def lin(kw, kb, d_in, d_out):
        bound = 1.0 / jnp.sqrt(jnp.float32(d_in))
        W = jax.random.uniform(kw, (d_in, d_out), jnp.float32, -bound, bound)
        b = jax.random.uniform(kb, (1, d_out), jnp.float32, -bound, bound)
        return W, b

    W1, b1 = lin(keys[0], keys[1], d0, d1)   # encoder linear 1
    W2, b2 = lin(keys[2], keys[3], d1, d2)   # encoder linear 2
    W3, b3 = lin(keys[4], keys[5], d2, d1)   # decoder linear 1
    W4, b4 = lin(keys[6], keys[7], d1, d0)   # decoder linear 2
    return dict(W1=W1, b1=b1, W2=W2, b2=b2, W3=W3, b3=b3, W4=W4, b4=b4)


def cycle_ae_reference(x, p):
    """Pure-JAX f32 reference for correctness checking."""
    def lrelu(h):
        return jnp.where(h >= 0, h, 0.01 * h)

    def sig(h):
        return 1.0 / (1.0 + jnp.exp(-h))

    def enc(h):
        return sig(lrelu(h @ p["W1"] + p["b1"]) @ p["W2"] + p["b2"])

    def dec(h):
        return sig(lrelu(h @ p["W3"] + p["b3"]) @ p["W4"] + p["b4"])

    z = enc(x)
    xr = dec(z)
    zr = enc(xr)
    return z, xr, zr


if __name__ == "__main__":
    input_dims = [64, 32, 16]       # [d0, d1, d2]
    B = 16

    key = jax.random.PRNGKey(0)
    kx, kp = jax.random.split(key)
    x = jax.random.normal(kx, (B, input_dims[0]), jnp.float32)
    params = init_params(kp, input_dims)

    z, x_recon, z_recon = cycle_ae_forward(x, params)
    jax.block_until_ready((z, x_recon, z_recon))

    z_r, xr_r, zr_r = cycle_ae_reference(x, params)
    assert z.shape == (B, input_dims[2])
    assert x_recon.shape == (B, input_dims[0])
    assert z_recon.shape == (B, input_dims[2])
    # Tolerance loosened vs. pure-f32 reference: kernel uses bf16 matmul
    # operands (f32 accumulation) and an approximate EUP reciprocal in sigmoid.
    assert jnp.allclose(z, z_r, atol=3e-2)
    assert jnp.allclose(x_recon, xr_r, atol=3e-2)
    assert jnp.allclose(z_recon, zr_r, atol=3e-2)

    print("KERNEL_OK")
</pallas_src>

<mosaic_0001>
module attributes {stable_mosaic.version = 11 : i64} {
  func.func @cycle_ae_kernel(%arg0: i32, %arg1: memref<16x128xf32, #tpu.memory_space<vmem>>, %arg2: memref<128x128xbf16, #tpu.memory_space<vmem>>, %arg3: memref<1x128xf32, #tpu.memory_space<vmem>>, %arg4: memref<128x128xbf16, #tpu.memory_space<vmem>>, %arg5: memref<1x128xf32, #tpu.memory_space<vmem>>, %arg6: memref<128x128xbf16, #tpu.memory_space<vmem>>, %arg7: memref<1x128xf32, #tpu.memory_space<vmem>>, %arg8: memref<128x128xbf16, #tpu.memory_space<vmem>>, %arg9: memref<1x128xf32, #tpu.memory_space<vmem>>, %arg10: memref<16x128xf32, #tpu.memory_space<vmem>>, %arg11: memref<16x128xf32, #tpu.memory_space<vmem>>, %arg12: memref<16x128xf32, #tpu.memory_space<vmem>>) attributes {dimension_semantics = [#tpu.dimension_semantics<parallel>], iteration_bounds = array<i64: 1>, scalar_prefetch = 0 : i64, scratch_operands = 0 : i64, tpu.core_type = #tpu.core_type<tc>, window_params = [{transform_indices = @transform_0, window_bounds = array<i64: 16, 128>}, {pipeline_mode = #tpu.pipeline_mode<synchronous>, transform_indices = @transform_1, window_bounds = array<i64: 128, 128>}, {pipeline_mode = #tpu.pipeline_mode<synchronous>, transform_indices = @transform_2, window_bounds = array<i64: 1, 128>}, {pipeline_mode = #tpu.pipeline_mode<synchronous>, transform_indices = @transform_3, window_bounds = array<i64: 128, 128>}, {pipeline_mode = #tpu.pipeline_mode<synchronous>, transform_indices = @transform_4, window_bounds = array<i64: 1, 128>}, {pipeline_mode = #tpu.pipeline_mode<synchronous>, transform_indices = @transform_5, window_bounds = array<i64: 128, 128>}, {pipeline_mode = #tpu.pipeline_mode<synchronous>, transform_indices = @transform_6, window_bounds = array<i64: 1, 128>}, {pipeline_mode = #tpu.pipeline_mode<synchronous>, transform_indices = @transform_7, window_bounds = array<i64: 128, 128>}, {pipeline_mode = #tpu.pipeline_mode<synchronous>, transform_indices = @transform_8, window_bounds = array<i64: 1, 128>}, {transform_indices = @transform_9, window_bounds = array<i64: 16, 128>}, {transform_indices = @transform_10, window_bounds = array<i64: 16, 128>}, {transform_indices = @transform_11, window_bounds = array<i64: 16, 128>}]} {
    %c0 = arith.constant 0 : index
    %c0_0 = arith.constant 0 : index
    %0 = vector.load %arg2[%c0, %c0_0] : memref<128x128xbf16, #tpu.memory_space<vmem>>, vector<128x128xbf16>
    %c0_1 = arith.constant 0 : index
    %c0_2 = arith.constant 0 : index
    %1 = vector.load %arg4[%c0_1, %c0_2] : memref<128x128xbf16, #tpu.memory_space<vmem>>, vector<128x128xbf16>
    %c0_3 = arith.constant 0 : index
    %c0_4 = arith.constant 0 : index
    %2 = vector.load %arg6[%c0_3, %c0_4] : memref<128x128xbf16, #tpu.memory_space<vmem>>, vector<128x128xbf16>
    %c0_5 = arith.constant 0 : index
    %c0_6 = arith.constant 0 : index
    %3 = vector.load %arg8[%c0_5, %c0_6] : memref<128x128xbf16, #tpu.memory_space<vmem>>, vector<128x128xbf16>
    %c0_7 = arith.constant 0 : index
    %c0_8 = arith.constant 0 : index
    %4 = vector.load %arg3[%c0_7, %c0_8] : memref<1x128xf32, #tpu.memory_space<vmem>>, vector<1x128xf32>
    %c0_9 = arith.constant 0 : index
    %c0_10 = arith.constant 0 : index
    %5 = vector.load %arg5[%c0_9, %c0_10] : memref<1x128xf32, #tpu.memory_space<vmem>>, vector<1x128xf32>
    %c0_11 = arith.constant 0 : index
    %c0_12 = arith.constant 0 : index
    %6 = vector.load %arg7[%c0_11, %c0_12] : memref<1x128xf32, #tpu.memory_space<vmem>>, vector<1x128xf32>
    %c0_13 = arith.constant 0 : index
    %c0_14 = arith.constant 0 : index
    %7 = vector.load %arg9[%c0_13, %c0_14] : memref<1x128xf32, #tpu.memory_space<vmem>>, vector<1x128xf32>
    %c0_15 = arith.constant 0 : index
    %c0_16 = arith.constant 0 : index
    %8 = vector.load %arg1[%c0_15, %c0_16] : memref<16x128xf32, #tpu.memory_space<vmem>>, vector<16x128xf32>
    %9 = arith.truncf %8 : vector<16x128xf32> to vector<16x128xbf16>
    %cst = arith.constant dense<0.000000e+00> : vector<16x128xf32>
    %10 = tpu.matmul %9, %0, %cst {dimension_numbers = #tpu.dot_dimension_numbers<[1], [0], [0], [1], [0, 0, 1, 1], [], []>} : vector<16x128xbf16>, vector<128x128xbf16>, vector<16x128xf32> -> vector<16x128xf32>
    %11 = vector.broadcast %4 : vector<1x128xf32> to vector<16x128xf32>
    %12 = arith.addf %10, %11 : vector<16x128xf32>
    %cst_17 = arith.constant 0.000000e+00 : f32
    %13 = vector.broadcast %cst_17 : f32 to vector<16x128xf32>
    %14 = arith.cmpf oge, %12, %13 : vector<16x128xf32>
    %cst_18 = arith.constant 0.00999999977 : f32
    %15 = vector.broadcast %cst_18 : f32 to vector<16x128xf32>
    %16 = arith.mulf %15, %12 : vector<16x128xf32>
    %17 = arith.select %14, %12, %16 : vector<16x128xi1>, vector<16x128xf32>
    %18 = arith.truncf %17 : vector<16x128xf32> to vector<16x128xbf16>
    %cst_19 = arith.constant dense<0.000000e+00> : vector<16x128xf32>
    %19 = tpu.matmul %18, %1, %cst_19 {dimension_numbers = #tpu.dot_dimension_numbers<[1], [0], [0], [1], [0, 0, 1, 1], [], []>} : vector<16x128xbf16>, vector<128x128xbf16>, vector<16x128xf32> -> vector<16x128xf32>
    %20 = vector.broadcast %5 : vector<1x128xf32> to vector<16x128xf32>
    %21 = arith.addf %19, %20 : vector<16x128xf32>
    %cst_20 = arith.constant 0.000000e+00 : f32
    %22 = vector.broadcast %cst_20 : f32 to vector<16x128xf32>
    %23 = arith.subf %22, %21 : vector<16x128xf32>
    %24 = math.exp %23 : vector<16x128xf32>
    %cst_21 = arith.constant 1.000000e+00 : f32
    %25 = vector.broadcast %cst_21 : f32 to vector<16x128xf32>
    %26 = arith.addf %25, %24 : vector<16x128xf32>
    %27 = tpu.reciprocal %26 {approx = true} : vector<16x128xf32> -> vector<16x128xf32>
    %28 = arith.truncf %27 : vector<16x128xf32> to vector<16x128xbf16>
    %cst_22 = arith.constant dense<0.000000e+00> : vector<16x128xf32>
    %29 = tpu.matmul %28, %2, %cst_22 {dimension_numbers = #tpu.dot_dimension_numbers<[1], [0], [0], [1], [0, 0, 1, 1], [], []>} : vector<16x128xbf16>, vector<128x128xbf16>, vector<16x128xf32> -> vector<16x128xf32>
    %30 = vector.broadcast %6 : vector<1x128xf32> to vector<16x128xf32>
    %31 = arith.addf %29, %30 : vector<16x128xf32>
    %cst_23 = arith.constant 0.000000e+00 : f32
    %32 = vector.broadcast %cst_23 : f32 to vector<16x128xf32>
    %33 = arith.cmpf oge, %31, %32 : vector<16x128xf32>
    %cst_24 = arith.constant 0.00999999977 : f32
    %34 = vector.broadcast %cst_24 : f32 to vector<16x128xf32>
    %35 = arith.mulf %34, %31 : vector<16x128xf32>
    %36 = arith.select %33, %31, %35 : vector<16x128xi1>, vector<16x128xf32>
    %37 = arith.truncf %36 : vector<16x128xf32> to vector<16x128xbf16>
    %cst_25 = arith.constant dense<0.000000e+00> : vector<16x128xf32>
    %38 = tpu.matmul %37, %3, %cst_25 {dimension_numbers = #tpu.dot_dimension_numbers<[1], [0], [0], [1], [0, 0, 1, 1], [], []>} : vector<16x128xbf16>, vector<128x128xbf16>, vector<16x128xf32> -> vector<16x128xf32>
    %39 = vector.broadcast %7 : vector<1x128xf32> to vector<16x128xf32>
    %40 = arith.addf %38, %39 : vector<16x128xf32>
    %cst_26 = arith.constant 0.000000e+00 : f32
    %41 = vector.broadcast %cst_26 : f32 to vector<16x128xf32>
    %42 = arith.subf %41, %40 : vector<16x128xf32>
    %43 = math.exp %42 : vector<16x128xf32>
    %cst_27 = arith.constant 1.000000e+00 : f32
    %44 = vector.broadcast %cst_27 : f32 to vector<16x128xf32>
    %45 = arith.addf %44, %43 : vector<16x128xf32>
    %46 = tpu.reciprocal %45 {approx = true} : vector<16x128xf32> -> vector<16x128xf32>
    %47 = arith.truncf %46 : vector<16x128xf32> to vector<16x128xbf16>
    %cst_28 = arith.constant dense<0.000000e+00> : vector<16x128xf32>
    %48 = tpu.matmul %47, %0, %cst_28 {dimension_numbers = #tpu.dot_dimension_numbers<[1], [0], [0], [1], [0, 0, 1, 1], [], []>} : vector<16x128xbf16>, vector<128x128xbf16>, vector<16x128xf32> -> vector<16x128xf32>
    %49 = vector.broadcast %4 : vector<1x128xf32> to vector<16x128xf32>
    %50 = arith.addf %48, %49 : vector<16x128xf32>
    %cst_29 = arith.constant 0.000000e+00 : f32
    %51 = vector.broadcast %cst_29 : f32 to vector<16x128xf32>
    %52 = arith.cmpf oge, %50, %51 : vector<16x128xf32>
    %cst_30 = arith.constant 0.00999999977 : f32
    %53 = vector.broadcast %cst_30 : f32 to vector<16x128xf32>
    %54 = arith.mulf %53, %50 : vector<16x128xf32>
    %55 = arith.select %52, %50, %54 : vector<16x128xi1>, vector<16x128xf32>
    %56 = arith.truncf %55 : vector<16x128xf32> to vector<16x128xbf16>
    %cst_31 = arith.constant dense<0.000000e+00> : vector<16x128xf32>
    %57 = tpu.matmul %56, %1, %cst_31 {dimension_numbers = #tpu.dot_dimension_numbers<[1], [0], [0], [1], [0, 0, 1, 1], [], []>} : vector<16x128xbf16>, vector<128x128xbf16>, vector<16x128xf32> -> vector<16x128xf32>
    %58 = vector.broadcast %5 : vector<1x128xf32> to vector<16x128xf32>
    %59 = arith.addf %57, %58 : vector<16x128xf32>
    %cst_32 = arith.constant 0.000000e+00 : f32
    %60 = vector.broadcast %cst_32 : f32 to vector<16x128xf32>
    %61 = arith.subf %60, %59 : vector<16x128xf32>
    %62 = math.exp %61 : vector<16x128xf32>
    %cst_33 = arith.constant 1.000000e+00 : f32
    %63 = vector.broadcast %cst_33 : f32 to vector<16x128xf32>
    %64 = arith.addf %63, %62 : vector<16x128xf32>
    %65 = tpu.reciprocal %64 {approx = true} : vector<16x128xf32> -> vector<16x128xf32>
    %c0_34 = arith.constant 0 : index
    %c0_35 = arith.constant 0 : index
    %66 = vector.load %arg10[%c0_34, %c0_35] : memref<16x128xf32, #tpu.memory_space<vmem>>, vector<16x128xf32>
    tpu.vector_store %arg10[%c0_34, %c0_35], %27 {strides = array<i32>} : memref<16x128xf32, #tpu.memory_space<vmem>>, vector<16x128xf32>,
    %c0_36 = arith.constant 0 : index
    %c0_37 = arith.constant 0 : index
    %67 = vector.load %arg11[%c0_36, %c0_37] : memref<16x128xf32, #tpu.memory_space<vmem>>, vector<16x128xf32>
    tpu.vector_store %arg11[%c0_36, %c0_37], %46 {strides = array<i32>} : memref<16x128xf32, #tpu.memory_space<vmem>>, vector<16x128xf32>,
    %c0_38 = arith.constant 0 : index
    %c0_39 = arith.constant 0 : index
    %68 = vector.load %arg12[%c0_38, %c0_39] : memref<16x128xf32, #tpu.memory_space<vmem>>, vector<16x128xf32>
    tpu.vector_store %arg12[%c0_38, %c0_39], %65 {strides = array<i32>} : memref<16x128xf32, #tpu.memory_space<vmem>>, vector<16x128xf32>,
    return
  }
  func.func @transform_0(%arg0: i32) -> (i32, i32) {
    %c0_i32 = arith.constant 0 : i32
    %c0_i32_0 = arith.constant 0 : i32
    return %arg0, %c0_i32 : i32, i32
  }
  func.func @transform_1(%arg0: i32) -> (i32, i32) {
    %c0_i32 = arith.constant 0 : i32
    %c0_i32_0 = arith.constant 0 : i32
    %c0_i32_1 = arith.constant 0 : i32
    return %c0_i32, %c0_i32_0 : i32, i32
  }
  func.func @transform_2(%arg0: i32) -> (i32, i32) {
    %c0_i32 = arith.constant 0 : i32
    %c0_i32_0 = arith.constant 0 : i32
    %c0_i32_1 = arith.constant 0 : i32
    return %c0_i32, %c0_i32_0 : i32, i32
  }
  func.func @transform_3(%arg0: i32) -> (i32, i32) {
    %c0_i32 = arith.constant 0 : i32
    %c0_i32_0 = arith.constant 0 : i32
    %c0_i32_1 = arith.constant 0 : i32
    return %c0_i32, %c0_i32_0 : i32, i32
  }
  func.func @transform_4(%arg0: i32) -> (i32, i32) {
    %c0_i32 = arith.constant 0 : i32
    %c0_i32_0 = arith.constant 0 : i32
    %c0_i32_1 = arith.constant 0 : i32
    return %c0_i32, %c0_i32_0 : i32, i32
  }
  func.func @transform_5(%arg0: i32) -> (i32, i32) {
    %c0_i32 = arith.constant 0 : i32
    %c0_i32_0 = arith.constant 0 : i32
    %c0_i32_1 = arith.constant 0 : i32
    return %c0_i32, %c0_i32_0 : i32, i32
  }
  func.func @transform_6(%arg0: i32) -> (i32, i32) {
    %c0_i32 = arith.constant 0 : i32
    %c0_i32_0 = arith.constant 0 : i32
    %c0_i32_1 = arith.constant 0 : i32
    return %c0_i32, %c0_i32_0 : i32, i32
  }
  func.func @transform_7(%arg0: i32) -> (i32, i32) {
    %c0_i32 = arith.constant 0 : i32
    %c0_i32_0 = arith.constant 0 : i32
    %c0_i32_1 = arith.constant 0 : i32
    return %c0_i32, %c0_i32_0 : i32, i32
  }
  func.func @transform_8(%arg0: i32) -> (i32, i32) {
    %c0_i32 = arith.constant 0 : i32
    %c0_i32_0 = arith.constant 0 : i32
    %c0_i32_1 = arith.constant 0 : i32
    return %c0_i32, %c0_i32_0 : i32, i32
  }
  func.func @transform_9(%arg0: i32) -> (i32, i32) {
    %c0_i32 = arith.constant 0 : i32
    %c0_i32_0 = arith.constant 0 : i32
    return %arg0, %c0_i32 : i32, i32
  }
  func.func @transform_10(%arg0: i32) -> (i32, i32) {
    %c0_i32 = arith.constant 0 : i32
    %c0_i32_0 = arith.constant 0 : i32
    return %arg0, %c0_i32 : i32, i32
  }
  func.func @transform_11(%arg0: i32) -> (i32, i32) {
    %c0_i32 = arith.constant 0 : i32
    %c0_i32_0 = arith.constant 0 : i32
    return %arg0, %c0_i32 : i32, i32
  }
}

</mosaic_0001>

<bundles_post_ra>
// kernel: tpu_custom_call.1
= control target key start
LH: loop header
LB: loop body
LE: loop exit
PB: predicated region body
PF: predicated region fallthrough
CT: control target
= control target key end

     0   :  { %17 = vsyncpa [#allocation3], 0  ;;  %s1556_s0 = inlined_call_operand.hbm [shape: f32[16,128], index: 0, kind: input, shape index: {}]   ;;  %s1557_s1 = inlined_call_operand.hbm [shape: bf16[128,128], index: 1, kind: input, shape index: {}]   ;;  %s1558_s2 = inlined_call_operand.vmem [shape: f32[1,128], index: 2, kind: input, shape index: {}]   ;;  %s1559_s3 = inlined_call_operand.hbm [shape: bf16[128,128], index: 3, kind: input, shape index: {}]   ;;  %s1560_s4 = inlined_call_operand.vmem [shape: f32[1,128], index: 4, kind: input, shape index: {}]   ;;  %s1561_s5 = inlined_call_operand.hbm [shape: bf16[128,128], index: 5, kind: input, shape index: {}]   ;;  %s1562_s6 = inlined_call_operand.vmem [shape: f32[1,128], index: 6, kind: input, shape index: {}]   ;;  %s1563_s7 = inlined_call_operand.hbm [shape: bf16[128,128], index: 7, kind: input, shape index: {}]   ;;  %s1564_s8 = inlined_call_operand.vmem [shape: f32[1,128], index: 8, kind: input, shape index: {}]   ;;  %s1565_s9 = inlined_call_operand.hbm [shape: f32[16,128], index: 9, kind: output, shape index: {0}]   ;;  %s1566_s10 = inlined_call_operand.hbm [shape: f32[16,128], index: 10, kind: output, shape index: {1}]   ;;  %s1567_s11 = inlined_call_operand.hbm [shape: f32[16,128], index: 11, kind: output, shape index: {2}]  }
   0x1   :  { %18 = vsyncpa [#allocation6], 0 }
   0x2   :  { %19 = vsyncpa [#allocation9], 0 }
   0x3   :  { %20 = vsyncpa [#allocation4], 0 }
   0x4   :  { %21 = vsyncpa [#allocation13], 0  ;;  %s1214_s17 = smov [#allocation5]   ;;  %s1028_s21 = scalar_lea.hbm %s1557_s1, 1024 }
   0x5   :  { %s39_s18 = sshll.u32 %s1214_s17, 4  ;;  %p1029_p0 = scmp.ne.s32.totalorder %s1557_s1, %s1028_s21  ;;  %s40_s18 = int_to_ptr.vmem [resolvable:$true] %s39_s18 }
   0x6   :  { %p1032_p1 = scmp.lt.u32.totalorder %s1028_s21, %s1557_s1 }
   0x8   :  { %p1034_p2 = pnand %p1032_p1, %p1029_p0 }
   0xa   :  { %1037 = shalt.err (!%p1034_p2)
}
   0xb   :  { %s1038_s26 = scalar_lea.vmem %s40_s18, 1024  ;;  %p1043_p4 = scmp.lt.s32.totalorder %s40_s18, %s40_s18 }
   0xc   :  { %p1039_p3 = scmp.ne.s32.totalorder %s40_s18, %s1038_s26  ;;  %p1044_p5 = scmp.lt.s32.totalorder %s1038_s26, %s1038_s26 }
   0xe   :  { %p1045_p6 = por %p1044_p5, %p1043_p4 }
  0x10   :  { %p1046_p7 = pnand %p1045_p6, %p1039_p3 }
  0x12   :  { %1049 = shalt.err (!%p1046_p7)
}
  0x13   :  { %s1215_s27 = smov 64   ;;  %s1216_s28 = smov 4  }
  0x14   :  { %45 = dma.hbm_to_vmem [thread:$0]  %s1557_s1, 1024, %s40_s18, [#allocation6], %s1215_s27, %s1215_s27, %s1216_s28  }
  0x15   :  { %s1217_s12 = smov [#allocation8]   ;;  %s1218_s14 = smov [#allocation2]  }
  0x16   :  { %s67_s13 = sshll.u32 %s1217_s12, 4  ;;  %s27_s15 = sshll.u32 %s1218_s14, 4  ;;  %s68_s13 = int_to_ptr.vmem [resolvable:$true] %s67_s13  ;;  %s28_s15 = int_to_ptr.vmem [resolvable:$true] %s27_s15 }
  0x17   :  { %s1050_s19 = scalar_lea.hbm %s1561_s5, 1024 }
  0x18   :  { %p1051_p8 = scmp.ne.s32.totalorder %s1561_s5, %s1050_s19  ;;  %p1054_p9 = scmp.lt.u32.totalorder %s1050_s19, %s1561_s5 }
  0x1a   :  { %p1056_p10 = pnand %p1054_p9, %p1051_p8 }
  0x1c   :  { %1059 = shalt.err (!%p1056_p10)
}
  0x1d   :  { %s1060_s1 = scalar_lea.vmem %s68_s13, 1024  ;;  %p1065_p12 = scmp.lt.s32.totalorder %s68_s13, %s68_s13 }
  0x1e   :  { %p1061_p11 = scmp.ne.s32.totalorder %s68_s13, %s1060_s1  ;;  %p1066_p13 = scmp.lt.s32.totalorder %s1060_s1, %s1060_s1 }
  0x20   :  { %p1067_p0 = por %p1066_p13, %p1065_p12 }
  0x22   :  { %p1068_p1 = pnand %p1067_p0, %p1061_p11 }
  0x24   :  { %1071 = shalt.err (!%p1068_p1)
}
  0x25   :  { %73 = dma.hbm_to_vmem [thread:$0]  %s1561_s5, 1024, %s68_s13, [#allocation9], %s1215_s27, %s1215_s27, %s1216_s28  }
  0x26   :  { %s1072_s29 = scalar_lea.hbm %s1556_s0, 256 }
  0x27   :  { %p1073_p2 = scmp.ne.s32.totalorder %s1556_s0, %s1072_s29  ;;  %p1076_p3 = scmp.lt.u32.totalorder %s1072_s29, %s1556_s0 }
  0x29   :  { %p1078_p4 = pnand %p1076_p3, %p1073_p2 }
  0x2b   :  { %1081 = shalt.err (!%p1078_p4)
}
  0x2c   :  { %s1082_s17 = scalar_lea.vmem %s28_s15, 256  ;;  %p1087_p6 = scmp.lt.s32.totalorder %s28_s15, %s28_s15 }
  0x2d   :  { %p1083_p5 = scmp.ne.s32.totalorder %s28_s15, %s1082_s17  ;;  %p1088_p7 = scmp.lt.s32.totalorder %s1082_s17, %s1082_s17 }
  0x2f   :  { %p1089_p8 = por %p1088_p7, %p1087_p6 }
  0x31   :  { %p1090_p9 = pnand %p1089_p8, %p1083_p5 }
  0x33   :  { %1093 = shalt.err (!%p1090_p9)
}
  0x34   :  { %s1219_s5 = smov 128   ;;  %s1220_s13 = smov 8  }
  0x35   :  { %33 = dma.hbm_to_vmem [thread:$0]  %s1556_s0, 256, %s28_s15, [#allocation3], %s1219_s5, %s1219_s5, %s1220_s13  }
  0x36   :  { %s1221_s21 = smov [#allocation7]   ;;  %s1222_s23 = smov [#allocation10]  }
  0x37   :  { %s53_s22 = sshll.u32 %s1221_s21, 4  ;;  %s81_s1 = sshll.u32 %s1222_s23, 4  ;;  %s54_s22 = int_to_ptr.vmem [resolvable:$true] %s53_s22  ;;  %s82_s1 = int_to_ptr.vmem [resolvable:$true] %s81_s1 }
  0x38   :  { %s1094_s25 = scalar_lea.hbm %s1559_s3, 1024 }
  0x39   :  { %p1095_p10 = scmp.ne.s32.totalorder %s1559_s3, %s1094_s25  ;;  %p1098_p11 = scmp.lt.u32.totalorder %s1094_s25, %s1559_s3 }
  0x3b   :  { %p1100_p12 = pnand %p1098_p11, %p1095_p10 }
  0x3d   :  { %1103 = shalt.err (!%p1100_p12)
}
  0x3e   :  { %s1104_s0 = scalar_lea.vmem %s54_s22, 1024  ;;  %p1109_p0 = scmp.lt.s32.totalorder %s54_s22, %s54_s22 }
  0x3f   :  { %p1105_p13 = scmp.ne.s32.totalorder %s54_s22, %s1104_s0  ;;  %p1110_p1 = scmp.lt.s32.totalorder %s1104_s0, %s1104_s0 }
  0x41   :  { %p1111_p2 = por %p1110_p1, %p1109_p0 }
  0x43   :  { %p1112_p3 = pnand %p1111_p2, %p1105_p13 }
  0x45   :  { %1115 = shalt.err (!%p1112_p3)
}
  0x46   :  { %59 = dma.hbm_to_vmem [thread:$0]  %s1559_s3, 1024, %s54_s22, [#allocation6], %s1215_s27, %s1215_s27, %s1216_s28  }
  0x47   :  { %s1116_s19 = scalar_lea.hbm %s1563_s7, 1024 }
  0x48   :  { %p1117_p4 = scmp.ne.s32.totalorder %s1563_s7, %s1116_s19  ;;  %p1120_p5 = scmp.lt.u32.totalorder %s1116_s19, %s1563_s7 }
  0x4a   :  { %p1122_p6 = pnand %p1120_p5, %p1117_p4 }
  0x4c   :  { %1125 = shalt.err (!%p1122_p6)
}
  0x4d   :  { %s1126_s24 = scalar_lea.vmem %s82_s1, 1024  ;;  %p1131_p8 = scmp.lt.s32.totalorder %s82_s1, %s82_s1 }
  0x4e   :  { %p1127_p7 = scmp.ne.s32.totalorder %s82_s1, %s1126_s24  ;;  %p1132_p9 = scmp.lt.s32.totalorder %s1126_s24, %s1126_s24 }
  0x50   :  { %p1133_p10 = por %p1132_p9, %p1131_p8 }
  0x52   :  { %p1134_p11 = pnand %p1133_p10, %p1127_p7 }
  0x54   :  { %1137 = shalt.err (!%p1134_p11)
}
  0x55   :  { %87 = dma.hbm_to_vmem [thread:$0]  %s1563_s7, 1024, %s82_s1, [#allocation9], %s1215_s27, %s1215_s27, %s1216_s28  }
  0x56   :  { %1204 = dma.done.wait [#allocation3], 256  }
  0x57   :  { %1205 = vsyncadd [#allocation3], 4294967040 }
  0x58   :  { %1206 = dma.done.wait [#allocation6], 2048  }
  0x59   :  { %1207 = vsyncadd [#allocation6], 4294965248 }
  0x5a   :  { %1208 = dma.done.wait [#allocation9], 2048  }
  0x5b   :  { %1209 = vsyncadd [#allocation9], 4294965248  ;;  %v1223_v0 = vmov 0.0   ;;  %vm1224_vm0 = vmmov 0   ;;  %v1369_v1 = vld [vmem:[#allocation5] sm:$0xff]   ;;  %v1372_v2 = vld [vmem:[#allocation5 + $0x8] sm:$0xff]  }
  0x5c   :  { %838 = vmatprep.subr.bf16.mxu0 %v1223_v0  ;;  %854 = vmatprep.mubr.msk.bf16.mxu0 %vm1224_vm0, %v1223_v0  ;;  %v1376_v3 = vld [vmem:[#allocation5 + $0x10] sm:$0xff]   ;;  %v1379_v4 = vld [vmem:[#allocation7] sm:$0xff]   ;;  %v1382_v5 = vld [vmem:[#allocation5 + $0x18] sm:$0xff]   ;;  %s1226_s29 = smov [#allocation11]  }
  0x5d   :  { %858 = vmatprep.subr.bf16.mxu1 %v1223_v0  ;;  %874 = vmatprep.mubr.msk.bf16.mxu1 %vm1224_vm0, %v1223_v0  ;;  %v1386_v6 = vld [vmem:[#allocation7 + $0x8] sm:$0xff]   ;;  %v1390_v7 = vld [vmem:[#allocation5 + $0x20] sm:$0xff]   ;;  %v1392_v8 = vld [vmem:[#allocation7 + $0x10] sm:$0xff]   ;;  %s703_s30 = sshll.u32 %s1226_s29, 4  ;;  %s704_s30 = int_to_ptr.vmem [resolvable:$true] %s703_s30 }
  0x5e   :  { %839 = vmatpush3.bf16.msra.mxu0 %v1369_v1  ;;  %859 = vmatpush3.bf16.msra.mxu1 %v1379_v4  ;;  %v1396_v9 = vld [vmem:[#allocation5 + $0x28] sm:$0xff]   ;;  %v1399_v10 = vld [vmem:[#allocation7 + $0x18] sm:$0xff]   ;;  %v1404_v11 = vld [vmem:[#allocation5 + $0x30] sm:$0xff]  }
  0x5f   :  { %840 = vmatprep.subr.bf16.mxu0 %v1223_v0  ;;  %860 = vmatprep.subr.bf16.mxu1 %v1223_v0  ;;  %v1407_v12 = vld [vmem:[#allocation7 + $0x20] sm:$0xff]   ;;  %v1412_v13 = vld [vmem:[#allocation5 + $0x38] sm:$0xff]   ;;  %v174_v14 = vld [vmem:[#allocation2] sm:$0xff] }
  0x60   :  { %v175_v15 = vld [vmem:[#allocation2 + $0x8] sm:$0xff]  ;;  %v1418_v16 = vld [vmem:[#allocation7 + $0x28] sm:$0xff]   ;;  %v1427_v18 = vld [vmem:[#allocation7 + $0x30] sm:$0xff]  }
  0x61   :  { %v176_v17 = vpack.c.bf16 %v175_v15, %v174_v14  ;;  %v1431_v19 = vld [vmem:[#allocation7 + $0x38] sm:$0xff]   ;;  %v1438_v20 = vld [vmem:[%s1558_s2] ss:$0 sm:$0xff]  ;;  %v988_v32 = vld [vmem:[#allocation8] sm:$0xff]  }
  0x62   :  { %841 = vmatpush3.bf16.msra.mxu0 %v1372_v2  ;;  %861 = vmatpush3.bf16.msra.mxu1 %v1386_v6  ;;  %v989_v33 = vld [vmem:[#allocation8 + $0x8] sm:$0xff]   ;;  %v990_v34 = vld [vmem:[#allocation8 + $0x10] sm:$0xff]   ;;  %v991_v35 = vld [vmem:[#allocation8 + $0x18] sm:$0xff]  }
  0x63   :  { %842 = vmatprep.subr.bf16.mxu0 %v1223_v0  ;;  %862 = vmatprep.subr.bf16.mxu1 %v1223_v0  ;;  %v992_v36 = vld [vmem:[#allocation8 + $0x20] sm:$0xff]   ;;  %v993_v37 = vld [vmem:[#allocation8 + $0x28] sm:$0xff]   ;;  %v994_v38 = vld [vmem:[#allocation8 + $0x30] sm:$0xff]  }
  0x64   :  { %v995_v39 = vld [vmem:[#allocation8 + $0x38] sm:$0xff]   ;;  %v996_v40 = vld [vmem:[#allocation10] sm:$0xff]   ;;  %v997_v41 = vld [vmem:[#allocation10 + $0x8] sm:$0xff]  }
  0x65   :  { %v998_v42 = vld [vmem:[#allocation10 + $0x10] sm:$0xff]   ;;  %v999_v43 = vld [vmem:[#allocation10 + $0x18] sm:$0xff]   ;;  %v1000_v44 = vld [vmem:[#allocation10 + $0x20] sm:$0xff]  }
  0x66   :  { %843 = vmatpush3.bf16.msra.mxu0 %v1376_v3  ;;  %863 = vmatpush3.bf16.msra.mxu1 %v1392_v8  ;;  %v1001_v45 = vld [vmem:[#allocation10 + $0x28] sm:$0xff]   ;;  %v1461_v46 = vld [vmem:[%s1560_s4] ss:$0 sm:$0xff] }
  0x67   :  { %844 = vmatprep.subr.bf16.mxu0 %v1223_v0  ;;  %864 = vmatprep.subr.bf16.mxu1 %v1223_v0 }
  0x6a   :  { %845 = vmatpush3.bf16.msra.mxu0 %v1382_v5  ;;  %865 = vmatpush3.bf16.msra.mxu1 %v1399_v10 }
  0x6b   :  { %846 = vmatprep.subr.bf16.mxu0 %v1223_v0  ;;  %866 = vmatprep.subr.bf16.mxu1 %v1223_v0 }
  0x6e   :  { %847 = vmatpush3.bf16.msra.mxu0 %v1390_v7  ;;  %867 = vmatpush3.bf16.msra.mxu1 %v1407_v12 }
  0x6f   :  { %848 = vmatprep.subr.bf16.mxu0 %v1223_v0  ;;  %868 = vmatprep.subr.bf16.mxu1 %v1223_v0 }
  0x72   :  { %849 = vmatpush3.bf16.msra.mxu0 %v1396_v9  ;;  %869 = vmatpush3.bf16.msra.mxu1 %v1418_v16 }
  0x73   :  { %850 = vmatprep.subr.bf16.mxu0 %v1223_v0  ;;  %870 = vmatprep.subr.bf16.mxu1 %v1223_v0 }
  0x76   :  { %851 = vmatpush3.bf16.msra.mxu0 %v1404_v11  ;;  %871 = vmatpush3.bf16.msra.mxu1 %v1427_v18 }
  0x77   :  { %852 = vmatprep.subr.bf16.mxu0 %v1223_v0  ;;  %872 = vmatprep.subr.bf16.mxu1 %v1223_v0 }
  0x7a   :  { %853 = vmatpush3.bf16.msra.mxu0 %v1412_v13  ;;  %873 = vmatpush3.bf16.msra.mxu1 %v1431_v19 }
  0x7b   :  { %878 = vmatprep.subr.bf16.mxu0 %v1223_v0  ;;  %898 = vmatprep.subr.bf16.mxu1 %v1223_v0 }
  0x7d   :  { %855 = vmatmul.mubr.bf16.vlgmr.msra.gmra.mrb[0].mxu0 %v176_v17 }
  0x7e   :  { %894 = vmatprep.mubr.msk.bf16.mxu0 %vm1224_vm0, %v1223_v0  ;;  %879 = vmatpush3.bf16.msra.mxu0 %v988_v32 }
  0x7f   :  { %880 = vmatprep.subr.bf16.mxu0 %v1223_v0 }
  0x82   :  { %881 = vmatpush3.bf16.msra.mxu0 %v989_v33 }
  0x83   :  { %882 = vmatprep.subr.bf16.mxu0 %v1223_v0 }
  0x86   :  { %883 = vmatpush3.bf16.msra.mxu0 %v990_v34 }
  0x87   :  { %884 = vmatprep.subr.bf16.mxu0 %v1223_v0 }
  0x8a   :  { %885 = vmatpush3.bf16.msra.mxu0 %v991_v35 }
  0x8b   :  { %886 = vmatprep.subr.bf16.mxu0 %v1223_v0 }
  0x8e   :  { %887 = vmatpush3.bf16.msra.mxu0 %v992_v36 }
  0x8f   :  { %888 = vmatprep.subr.bf16.mxu0 %v1223_v0 }
  0x92   :  { %889 = vmatpush3.bf16.msra.mxu0 %v993_v37 }
  0x93   :  { %890 = vmatprep.subr.bf16.mxu0 %v1223_v0 }
  0x96   :  { %891 = vmatpush3.bf16.msra.mxu0 %v994_v38 }
  0x97   :  { %892 = vmatprep.subr.bf16.mxu0 %v1223_v0 }
  0x9a   :  { %893 = vmatpush3.bf16.msra.mxu0 %v995_v39 }
  0x9b   :  { %918 = vmatprep.subr.bf16.mxu0 %v1223_v0 }
 0x150   :  { %v265_v21 = vpop.f32.mrb[0].mxu0 }
 0x151   :  { %v266_v22 = vadd.f32 %v1438_v20, %v265_v21  ;;  %v856_v23 = vpop.f32.mrb[1].mxu0 }
 0x152   :  { %v268_v24 = vpop.f32.mrb[2].mxu0 }
 0x153   :  { %v274_v25 = vmul.f32 0.01, %v266_v22  ;;  %v269_v26 = vadd.f32 %v1438_v20, %v268_v24  ;;  %v857_v27 = vpop.f32.mrb[3].mxu0  ;;  %vm272_vm1 = vcmp.ge.f32.partialorder %v266_v22, 0.0 }
 0x155   :  { %vm273_vm2 = vcmp.ge.f32.partialorder %v269_v26, 0.0  ;;  %v275_v28 = vmul.f32 0.01, %v269_v26  ;;  %v276_v29 = vsel %vm272_vm1, %v266_v22, %v274_v25 }
 0x157   :  { %v277_v30 = vsel %vm273_vm2, %v269_v26, %v275_v28 }
 0x158   :  { %v278_v31 = vpack.c.bf16 %v277_v30, %v276_v29 }
 0x15a   :  { %875 = vmatmul.mubr.bf16.vlgmr.msra.gmra.mrb[0].mxu1 %v278_v31 }
 0x15b   :  { %914 = vmatprep.mubr.msk.bf16.mxu1 %vm1224_vm0, %v1223_v0  ;;  %899 = vmatpush3.bf16.msra.mxu1 %v996_v40 }
 0x15c   :  { %900 = vmatprep.subr.bf16.mxu1 %v1223_v0 }
 0x15f   :  { %901 = vmatpush3.bf16.msra.mxu1 %v997_v41 }
 0x160   :  { %902 = vmatprep.subr.bf16.mxu1 %v1223_v0 }
 0x163   :  { %903 = vmatpush3.bf16.msra.mxu1 %v998_v42 }
 0x164   :  { %904 = vmatprep.subr.bf16.mxu1 %v1223_v0 }
 0x167   :  { %905 = vmatpush3.bf16.msra.mxu1 %v999_v43 }
 0x168   :  { %906 = vmatprep.subr.bf16.mxu1 %v1223_v0 }
 0x16b   :  { %907 = vmatpush3.bf16.msra.mxu1 %v1000_v44 }
 0x16c   :  { %908 = vmatprep.subr.bf16.mxu1 %v1223_v0 }
 0x16f   :  { %909 = vmatpush3.bf16.msra.mxu1 %v1001_v45 }
 0x170   :  { %910 = vmatprep.subr.bf16.mxu1 %v1223_v0 }
 0x22d   :  { %v367_v47 = vpop.f32.mrb[0].mxu1 }
 0x22e   :  { %v368_v48 = vadd.f32 %v1461_v46, %v367_v47  ;;  %v876_v49 = vpop.f32.mrb[1].mxu1 }
 0x22f   :  { %v370_v50 = vpop.f32.mrb[2].mxu1 }
 0x230   :  { %v374_v51 = vsub.f32 0.0, %v368_v48  ;;  %v371_v52 = vadd.f32 %v1461_v46, %v370_v50  ;;  %v877_v53 = vpop.f32.mrb[3].mxu1 }
 0x232   :  { %v376_v54 = vmul.f32 1.442695, %v374_v51  ;;  %v375_v55 = vsub.f32 0.0, %v371_v52 }
 0x234   :  { %1004 = vpow2.f32 %v376_v54  ;;  %v378_v56 = vmul.f32 1.442695, %v375_v55 }
 0x236   :  { %1006 = vpow2.f32 %v378_v56 }
 0x23e   :  { %v1005_v57 = vpop.eup %1004 }
 0x23f   :  { %v380_v58 = vadd.f32 1.0, %v1005_v57 }
 0x240   :  { %v1007_v59 = vpop.eup %1006 }
 0x241   :  { %1008 = vrcp.f32 %v380_v58  ;;  %v381_v60 = vadd.f32 1.0, %v1007_v59 }
 0x243   :  { %1010 = vrcp.f32 %v381_v60 }
 0x24b   :  { %v1009_v61 = vpop.eup %1008 }
 0x24c   :  { %692 = vst [vmem:[#allocation11] sm:$0xff] %v1009_v61 }
 0x24d   :  { %v1011_v62 = vpop.eup %1010 }
 0x24e   :  { %693 = vst [vmem:[#allocation11 + $0x8] sm:$0xff] %v1011_v62  ;;  %v384_v63 = vpack.c.bf16 %v1011_v62, %v1009_v61 }
 0x250   :  { %895 = vmatmul.mubr.bf16.vlgmr.msra.gmra.mrb[4].mxu0 %v384_v63 }
 0x251   :  { %919 = vmatpush3.bf16.msra.mxu0 %v1369_v1  ;;  %934 = vmatprep.mubr.msk.bf16.mxu0 %vm1224_vm0, %v1223_v0  ;;  %v1002_v1 = vld [vmem:[#allocation10 + $0x30] sm:$0xff]  }
 0x252   :  { %920 = vmatprep.subr.bf16.mxu0 %v1223_v0  ;;  %911 = vmatpush3.bf16.msra.mxu1 %v1002_v1 }
 0x253   :  { %912 = vmatprep.subr.bf16.mxu1 %v1223_v0 }
 0x255   :  { %921 = vmatpush3.bf16.msra.mxu0 %v1372_v2  ;;  %v1003_v2 = vld [vmem:[#allocation10 + $0x38] sm:$0xff]  }
 0x256   :  { %922 = vmatprep.subr.bf16.mxu0 %v1223_v0  ;;  %913 = vmatpush3.bf16.msra.mxu1 %v1003_v2 }
 0x257   :  { %938 = vmatprep.subr.bf16.mxu1 %v1223_v0 }
 0x259   :  { %923 = vmatpush3.bf16.msra.mxu0 %v1376_v3  ;;  %v766_v3 = vld [vmem:[%s1562_s6] ss:$0 sm:$0xff] }
 0x25a   :  { %924 = vmatprep.subr.bf16.mxu0 %v1223_v0 }
 0x25d   :  { %925 = vmatpush3.bf16.msra.mxu0 %v1382_v5 }
 0x25e   :  { %926 = vmatprep.subr.bf16.mxu0 %v1223_v0 }
 0x261   :  { %927 = vmatpush3.bf16.msra.mxu0 %v1390_v7 }
 0x262   :  { %928 = vmatprep.subr.bf16.mxu0 %v1223_v0 }
 0x265   :  { %929 = vmatpush3.bf16.msra.mxu0 %v1396_v9 }
 0x266   :  { %930 = vmatprep.subr.bf16.mxu0 %v1223_v0 }
 0x269   :  { %931 = vmatpush3.bf16.msra.mxu0 %v1404_v11 }
 0x26a   :  { %932 = vmatprep.subr.bf16.mxu0 %v1223_v0 }
 0x26d   :  { %933 = vmatpush3.bf16.msra.mxu0 %v1412_v13 }
 0x323   :  { %v473_v5 = vpop.f32.mrb[4].mxu0 }
 0x324   :  { %v474_v7 = vadd.f32 %v766_v3, %v473_v5  ;;  %v896_v9 = vpop.f32.mrb[5].mxu0 }
 0x325   :  { %v476_v11 = vpop.f32.mrb[6].mxu0 }
 0x326   :  { %v482_v14 = vmul.f32 0.01, %v474_v7  ;;  %v477_v15 = vadd.f32 %v766_v3, %v476_v11  ;;  %v897_v17 = vpop.f32.mrb[7].mxu0  ;;  %vm480_vm3 = vcmp.ge.f32.partialorder %v474_v7, 0.0 }
 0x328   :  { %vm481_vm4 = vcmp.ge.f32.partialorder %v477_v15, 0.0  ;;  %v483_v13 = vmul.f32 0.01, %v477_v15  ;;  %v484_v21 = vsel %vm480_vm3, %v474_v7, %v482_v14 }
 0x32a   :  { %v485_v22 = vsel %vm481_vm4, %v477_v15, %v483_v13 }
 0x32b   :  { %v486_v23 = vpack.c.bf16 %v485_v22, %v484_v21 }
 0x32d   :  { %915 = vmatmul.mubr.bf16.vlgmr.msra.gmra.mrb[4].mxu1 %v486_v23 }
 0x32e   :  { %939 = vmatpush3.bf16.msra.mxu1 %v1379_v4  ;;  %954 = vmatprep.mubr.msk.bf16.mxu1 %vm1224_vm0, %v1223_v0  ;;  %v775_v4 = vld [vmem:[%s1564_s8] ss:$0 sm:$0xff]  ;;  %s1225_s8 = smov [#allocation12]  }
 0x32f   :  { %940 = vmatprep.subr.bf16.mxu1 %v1223_v0  ;;  %s715_s26 = sshll.u32 %s1225_s8, 4  ;;  %s716_s26 = int_to_ptr.vmem [resolvable:$true] %s715_s26 }
 0x330   :  { %s1138_s12 = scalar_lea.vmem %s716_s26, 256  ;;  %p1143_p13 = scmp.lt.s32.totalorder %s716_s26, %s716_s26 }
 0x331   :  { %p1139_p12 = scmp.ne.s32.totalorder %s716_s26, %s1138_s12  ;;  %p1144_p0 = scmp.lt.s32.totalorder %s1138_s12, %s1138_s12 }
 0x332   :  { %941 = vmatpush3.bf16.msra.mxu1 %v1386_v6 }
 0x333   :  { %942 = vmatprep.subr.bf16.mxu1 %v1223_v0  ;;  %p1145_p1 = por %p1144_p0, %p1143_p13 }
 0x335   :  { %p1146_p2 = pnand %p1145_p1, %p1139_p12 }
 0x336   :  { %943 = vmatpush3.bf16.msra.mxu1 %v1392_v8 }
 0x337   :  { %944 = vmatprep.subr.bf16.mxu1 %v1223_v0 }
 0x33a   :  { %945 = vmatpush3.bf16.msra.mxu1 %v1399_v10 }
 0x33b   :  { %946 = vmatprep.subr.bf16.mxu1 %v1223_v0 }
 0x33e   :  { %947 = vmatpush3.bf16.msra.mxu1 %v1407_v12 }
 0x33f   :  { %948 = vmatprep.subr.bf16.mxu1 %v1223_v0 }
 0x342   :  { %949 = vmatpush3.bf16.msra.mxu1 %v1418_v16 }
 0x343   :  { %950 = vmatprep.subr.bf16.mxu1 %v1223_v0 }
 0x346   :  { %951 = vmatpush3.bf16.msra.mxu1 %v1427_v18 }
 0x347   :  { %952 = vmatprep.subr.bf16.mxu1 %v1223_v0 }
 0x34a   :  { %953 = vmatpush3.bf16.msra.mxu1 %v1431_v19 }
 0x400   :  { %v575_v6 = vpop.f32.mrb[4].mxu1 }
 0x401   :  { %v576_v8 = vadd.f32 %v775_v4, %v575_v6  ;;  %v916_v10 = vpop.f32.mrb[5].mxu1 }
 0x402   :  { %v578_v12 = vpop.f32.mrb[6].mxu1 }
 0x403   :  { %v582_v24 = vsub.f32 0.0, %v576_v8  ;;  %v579_v25 = vadd.f32 %v775_v4, %v578_v12  ;;  %v917_v26 = vpop.f32.mrb[7].mxu1 }
 0x405   :  { %v584_v16 = vmul.f32 1.442695, %v582_v24  ;;  %v583_v27 = vsub.f32 0.0, %v579_v25 }
 0x407   :  { %1012 = vpow2.f32 %v584_v16  ;;  %v586_v28 = vmul.f32 1.442695, %v583_v27 }
 0x409   :  { %1014 = vpow2.f32 %v586_v28 }
 0x411   :  { %v1013_v18 = vpop.eup %1012 }
 0x412   :  { %v588_v0 = vadd.f32 1.0, %v1013_v18 }
 0x413   :  { %v1015_v29 = vpop.eup %1014 }
 0x414   :  { %1016 = vrcp.f32 %v588_v0  ;;  %v589_v19 = vadd.f32 1.0, %v1015_v29 }
 0x416   :  { %1018 = vrcp.f32 %v589_v19 }
 0x41e   :  { %v1017_v30 = vpop.eup %1016 }
 0x41f   :  { %694 = vst [vmem:[#allocation12] sm:$0xff] %v1017_v30 }
 0x420   :  { %v1019_v31 = vpop.eup %1018 }
 0x421   :  { %695 = vst [vmem:[#allocation12 + $0x8] sm:$0xff] %v1019_v31  ;;  %v592_v32 = vpack.c.bf16 %v1019_v31, %v1017_v30 }
 0x423   :  { %935 = vmatmul.mubr.bf16.vlgmr.msra.gmra.mrb[8].mxu0 %v592_v32 }
 0x4f6   :  { %v627_v33 = vpop.f32.mrb[8].mxu0 }
 0x4f7   :  { %v628_v34 = vadd.f32 %v1438_v20, %v627_v33  ;;  %v936_v35 = vpop.f32.mrb[9].mxu0 }
 0x4f8   :  { %v630_v36 = vpop.f32.mrb[10].mxu0 }
 0x4f9   :  { %v636_v37 = vmul.f32 0.01, %v628_v34  ;;  %v631_v38 = vadd.f32 %v1438_v20, %v630_v36  ;;  %v937_v39 = vpop.f32.mrb[11].mxu0  ;;  %vm634_vm5 = vcmp.ge.f32.partialorder %v628_v34, 0.0 }
 0x4fb   :  { %vm635_vm6 = vcmp.ge.f32.partialorder %v631_v38, 0.0  ;;  %v637_v40 = vmul.f32 0.01, %v631_v38  ;;  %v638_v41 = vsel %vm634_vm5, %v628_v34, %v636_v37 }
 0x4fd   :  { %v639_v42 = vsel %vm635_vm6, %v631_v38, %v637_v40 }
 0x4fe   :  { %v640_v43 = vpack.c.bf16 %v639_v42, %v638_v41 }
 0x500   :  { %955 = vmatmul.mubr.bf16.vlgmr.msra.gmra.mrb[8].mxu1 %v640_v43 }
 0x501   :  { %1149 = shalt.err (!%p1146_p2)
}
 0x502   :  { %s1150_s14 = scalar_lea.hbm %s1566_s10, 256 }
 0x503   :  { %p1151_p3 = scmp.ne.s32.totalorder %s1566_s10, %s1150_s14  ;;  %p1154_p4 = scmp.lt.u32.totalorder %s1150_s14, %s1566_s10 }
 0x505   :  { %p1156_p5 = pnand %p1154_p4, %p1151_p3 }
 0x507   :  { %1159 = shalt.err (!%p1156_p5)
}
 0x508   :  { %721 = dma.vmem_to_hbm [thread:$0]  %s716_s26, 256, %s1566_s10, [#allocation13], %s1219_s5, %s1219_s5, %s1220_s13  }
 0x509   :  { %s1160_s18 = scalar_lea.vmem %s704_s30, 256  ;;  %p1165_p7 = scmp.lt.s32.totalorder %s704_s30, %s704_s30 }
 0x50a   :  { %p1161_p6 = scmp.ne.s32.totalorder %s704_s30, %s1160_s18  ;;  %p1166_p8 = scmp.lt.s32.totalorder %s1160_s18, %s1160_s18 }
 0x50c   :  { %p1167_p9 = por %p1166_p8, %p1165_p7 }
 0x50e   :  { %p1168_p10 = pnand %p1167_p9, %p1161_p6 }
 0x510   :  { %1171 = shalt.err (!%p1168_p10)
}
 0x511   :  { %s1172_s22 = scalar_lea.hbm %s1565_s9, 256 }
 0x512   :  { %p1173_p11 = scmp.ne.s32.totalorder %s1565_s9, %s1172_s22  ;;  %p1176_p12 = scmp.lt.u32.totalorder %s1172_s22, %s1565_s9 }
 0x514   :  { %p1178_p13 = pnand %p1176_p12, %p1173_p11 }
 0x516   :  { %1181 = shalt.err (!%p1178_p13)
}
 0x517   :  { %709 = dma.vmem_to_hbm [thread:$0]  %s704_s30, 256, %s1565_s9, [#allocation4], %s1219_s5, %s1219_s5, %s1220_s13  }
 0x518   :  { %s1227_s9 = smov [#allocation14]  }
 0x519   :  { %s727_s1 = sshll.u32 %s1227_s9, 4  ;;  %s728_s1 = int_to_ptr.vmem [resolvable:$true] %s727_s1 }
 0x51a   :  { %s1182_s6 = scalar_lea.vmem %s728_s1, 256  ;;  %p1187_p1 = scmp.lt.s32.totalorder %s728_s1, %s728_s1 }
 0x51b   :  { %p1183_p0 = scmp.ne.s32.totalorder %s728_s1, %s1182_s6  ;;  %p1188_p2 = scmp.lt.s32.totalorder %s1182_s6, %s1182_s6 }
 0x51d   :  { %p1189_p3 = por %p1188_p2, %p1187_p1 }
 0x51f   :  { %p1190_p4 = pnand %p1189_p3, %p1183_p0 }
 0x5d3   :  { %v675_v20 = vpop.f32.mrb[8].mxu1 }
 0x5d4   :  { %v676_v44 = vadd.f32 %v1461_v46, %v675_v20  ;;  %v956_v45 = vpop.f32.mrb[9].mxu1 }
 0x5d5   :  { %v678_v47 = vpop.f32.mrb[10].mxu1 }
 0x5d6   :  { %v682_v48 = vsub.f32 0.0, %v676_v44  ;;  %v679_v49 = vadd.f32 %v1461_v46, %v678_v47  ;;  %v957_v50 = vpop.f32.mrb[11].mxu1 }
 0x5d8   :  { %v684_v51 = vmul.f32 1.442695, %v682_v48  ;;  %v683_v52 = vsub.f32 0.0, %v679_v49 }
 0x5da   :  { %1020 = vpow2.f32 %v684_v51  ;;  %v686_v53 = vmul.f32 1.442695, %v683_v52 }
 0x5dc   :  { %1022 = vpow2.f32 %v686_v53 }
 0x5e4   :  { %v1021_v54 = vpop.eup %1020 }
 0x5e5   :  { %v688_v55 = vadd.f32 1.0, %v1021_v54 }
 0x5e6   :  { %v1023_v56 = vpop.eup %1022 }
 0x5e7   :  { %1024 = vrcp.f32 %v688_v55  ;;  %v689_v57 = vadd.f32 1.0, %v1023_v56 }
 0x5e9   :  { %1026 = vrcp.f32 %v689_v57 }
 0x5f1   :  { %v1025_v58 = vpop.eup %1024 }
 0x5f2   :  { %696 = vst [vmem:[#allocation14] sm:$0xff] %v1025_v58 }
 0x5f3   :  { %v1027_v59 = vpop.eup %1026 }
 0x5f4   :  { %697 = vst [vmem:[#allocation14 + $0x8] sm:$0xff] %v1027_v59 }
 0x5f5   :  { %1193 = shalt.err (!%p1190_p4)
}
 0x5f6   :  { %s1194_s26 = scalar_lea.hbm %s1567_s11, 256 }
 0x5f7   :  { %p1195_p5 = scmp.ne.s32.totalorder %s1567_s11, %s1194_s26  ;;  %p1198_p6 = scmp.lt.u32.totalorder %s1194_s26, %s1567_s11 }
 0x5f9   :  { %p1200_p7 = pnand %p1198_p6, %p1195_p5 }
 0x5fb   :  { %1203 = shalt.err (!%p1200_p7)
}
 0x5fc   :  { %733 = dma.vmem_to_hbm [thread:$0]  %s728_s1, 256, %s1567_s11, [#allocation13], %s1219_s5, %s1219_s5, %s1220_s13  }
 0x5fd   :  { %1210 = dma.done.wait [#allocation4], 256  }
 0x5fe   :  { %1211 = vsyncadd [#allocation4], 4294967040 }
 0x5ff   :  { %1212 = dma.done.wait [#allocation13], 512  }
 0x600   :  { %1213 = vsyncadd [#allocation13], 4294966784 }
 0x601   :  { %743 = vsyncpa [#allocation3], 1 }
 0x602   :  { %744 = vsyncpa [#allocation6], 1 }
 0x603   :  { %745 = vsyncpa [#allocation9], 1 }
 0x604   :  { %746 = vsyncpa [#allocation4], 1 }
 0x605   :  { %747 = vsyncpa [#allocation13], 1 }

</bundles_post_ra>
